<compile_context>
chip_gen: v5e
topology: v5e:2x2
jax: 0.10.0
libtpu: 0.0.40
codegen_flags: <defaults>
</compile_context>

<pallas_src>
import math

import jax
import jax.numpy as jnp
import numpy as np
from jax.experimental import pallas as pl
from jax.experimental.pallas import tpu as pltpu


# -----------------------------------------------------------------------------
# Diffusion schedule (glue; identical math to cosine_beta_schedule / buffers)
# -----------------------------------------------------------------------------
def cosine_beta_schedule(timesteps, s=0.008):
    steps = timesteps + 1
    x = jnp.linspace(0.0, float(timesteps), steps, dtype=jnp.float32)
    alphas_cumprod = jnp.cos((x / timesteps + s) / (1 + s) * math.pi * 0.5) ** 2
    alphas_cumprod = alphas_cumprod / alphas_cumprod[0]
    betas = 1.0 - alphas_cumprod[1:] / alphas_cumprod[:-1]
    return jnp.clip(betas, 0.0, 0.999)


def sinusoidal_time_embedding(t, dim):
    # t: (B,) int32 -> (B, dim) float32
    half = dim // 2
    freqs = jnp.exp(-math.log(10000.0) * jnp.arange(half, dtype=jnp.float32) / half)
    args = t.astype(jnp.float32)[:, None] * freqs[None, :]
    return jnp.concatenate([jnp.sin(args), jnp.cos(args)], axis=-1)


# -----------------------------------------------------------------------------
# Pallas kernel: fused q_sample + synthetic model + per-column squared error
# -----------------------------------------------------------------------------
def medsegdiff_loss_kernel(params_ref,   # VMEM (3, B, C, 1): [2*sa, soma, eff_bias]
                           w_ref,        # VMEM (C+Cc, C, 1): per-input-channel weight cols
                           img_ref,      # VMEM (B, C, T)
                           noise_ref,    # VMEM (B, C, T)
                           cond_ref,     # VMEM (B, Cc, T)
                           out_ref):     # VMEM (1, 1, T) per-column partial sums
    a2 = params_ref[0]        # (B, C, 1)  2 * sqrt_alphas_cumprod[t_b]
    soma = params_ref[1]      # (B, C, 1)  sqrt_one_minus_alphas_cumprod[t_b]
    beff = params_ref[2]      # (B, C, 1)  time-emb bias + conv bias + folded (-sa) shift

    noise = noise_ref[...]                      # (B, C, T)
    cond = cond_ref[...]                        # (B, Cc, T)

    # q_sample with the "-1" normalization shift folded into beff (it is linear
    # through the channel-mixing weights):  xs = 2*sa*img + soma*noise   (pure VPU)
    xs = a2 * img_ref[...] + soma * noise       # (B, C, T)

    c_in = img_ref.shape[1]
    c_cond = cond_ref.shape[1]

    # Channel mix on the VPU: (C + Cc) full-slab broadcast FMAs, exact f32.
    #   h[b, o, t] = beff[b, o] + sum_c wx[o, c] * xs[b, c, t]
    #                           + sum_c wc[o, c] * cond[b, c, t]
    # w_ref[c] is (C, 1) -> broadcasts against (B, 1, T) slices to (B, C, T).
    h = beff                                    # broadcasts to (B, C, T) on first add
    for c in range(c_in):
        h = h + w_ref[c] * xs[:, c:c + 1, :]
    for c in range(c_cond):
        h = h + w_ref[c_in + c] * cond[:, c:c + 1, :]

    model_out = jnp.tanh(h)                     # EUP
    diff = model_out - noise
    sq = diff * diff                            # (B, C, T)

    # Lane-dense per-column partial sums; final mean in wrapper (f32 tree reduce).
    s1 = jnp.sum(sq, axis=1, keepdims=True)     # (B, 1, T) sublane reduce
    out_ref[...] = jnp.sum(s1, axis=0, keepdims=True)   # (1, 1, T)


def _pick_lane_tile(hw, max_tile=8192, min_steps=4):
    """Largest lane tile (multiple of 128, divides hw, <= max_tile) that yields
    >= min_steps grid steps if possible; otherwise relax the step requirement."""
    cands = [t for t in range(128, min(hw, max_tile) + 1, 128) if hw % t == 0]
    if not cands:
        # hw too small / not a 128-multiple: single full-width tile (block == full dim).
        return hw
    for steps_req in (min_steps, 2, 1):
        ok = [t for t in cands if hw // t >= steps_req]
        if ok:
            return max(ok)
    return max(cands)


# -----------------------------------------------------------------------------
# Wrapper
# -----------------------------------------------------------------------------
def medsegdiff_forward(img, cond_img, noise, times,
                       sqrt_ac, sqrt_one_minus_ac,
                       wx, wc, wt, bias, t_emb_dim=32):
    """img, cond_img, noise: (B, C, H, W) NCHW float32. Returns scalar MSE loss."""
    B, C, H, W = img.shape
    Cc = cond_img.shape[1]
    HW = H * W

    # Lane-dense 3-D layout: (batch, channel, flattened spatial).
    img3 = img.reshape(B, C, HW)
    noise3 = noise.reshape(B, C, HW)
    cond3 = cond_img.reshape(B, Cc, HW)

    # Per-batch schedule coefficients (extract(a, t, shape)), broadcast per channel.
    sa = sqrt_ac[times].astype(jnp.float32)                  # (B,)
    soma = sqrt_one_minus_ac[times].astype(jnp.float32)      # (B,)
    a2_rows = jnp.broadcast_to((2.0 * sa)[:, None, None], (B, C, 1))
    s_rows = jnp.broadcast_to(soma[:, None, None], (B, C, 1))

    # Effective per-(b, o) bias: projected time embedding + conv bias + the (-sa)
    # normalization shift pushed through Wx (all O(B*C) work, done once by XLA).
    temb = sinusoidal_time_embedding(times, t_emb_dim)                     # (B, T_EMB)
    tbias = jnp.einsum('bt,ot->bo', temb, wt, precision='highest')         # (B, C)
    norm_shift = -sa[:, None] * jnp.sum(wx, axis=1)[None, :]               # (B, C)
    bias_eff = (tbias + norm_shift + bias[:, 0][None, :])[:, :, None]      # (B, C, 1)

    params = jnp.stack([a2_rows, s_rows, bias_eff], axis=0)                # (3, B, C, 1)

    # Constant-size (batch-independent) channel-mix weight, laid out so that
    # w_bc[c] is the (C, 1) column of output-channel coefficients for input c.
    w_bc = jnp.concatenate([wx.T, wc.T], axis=0)[:, :, None].astype(jnp.float32)  # (C+Cc, C, 1)

    lane_tile = _pick_lane_tile(HW)
    num_tiles = HW // lane_tile

    partials = pl.pallas_call(
        medsegdiff_loss_kernel,
        out_shape=jax.ShapeDtypeStruct((num_tiles, 1, lane_tile), jnp.float32),
        grid_spec=pltpu.PrefetchScalarGridSpec(
            num_scalar_prefetch=0,
            grid=(num_tiles,),
            in_specs=[
                pl.BlockSpec((3, B, C, 1), lambda j: (0, 0, 0, 0)),       # params (invariant)
                pl.BlockSpec((C + Cc, C, 1), lambda j: (0, 0, 0)),        # weights (invariant)
                pl.BlockSpec((B, C, lane_tile), lambda j: (0, 0, j)),     # img
                pl.BlockSpec((B, C, lane_tile), lambda j: (0, 0, j)),     # noise
                pl.BlockSpec((B, Cc, lane_tile), lambda j: (0, 0, j)),    # cond
            ],
            out_specs=pl.BlockSpec((1, 1, lane_tile), lambda j: (j, 0, 0)),
        ),
        compiler_params=pltpu.CompilerParams(
            dimension_semantics=("parallel",),
            vmem_limit_bytes=32 * 1024 * 1024,
        ),
    )(params, w_bc, img3, noise3, cond3)

    # Final mean (f32 tree reduce by XLA over lane-dense partials).
    return jnp.sum(partials) / (B * C * HW)


# -----------------------------------------------------------------------------
# Pure-JAX reference for sanity check (faithful to the PyTorch formulation)
# -----------------------------------------------------------------------------
def reference_forward(img, cond_img, noise, times, sqrt_ac, sqrt_one_minus_ac,
                      wx, wc, wt, bias, t_emb_dim=32):
    B, C, H, W = img.shape
    HW = H * W
    img_f = img.reshape(B, C, HW)
    cond_f = cond_img.reshape(B, -1, HW)
    noise_f = noise.reshape(B, C, HW)
    sa = sqrt_ac[times][:, None, None]
    soma = sqrt_one_minus_ac[times][:, None, None]
    x_start = img_f * 2.0 - 1.0
    x_t = sa * x_start + soma * noise_f
    temb = sinusoidal_time_embedding(times, t_emb_dim)
    h = (jnp.einsum('oc,bcs->bos', wx, x_t, precision='highest')
         + jnp.einsum('oc,bcs->bos', wc, cond_f, precision='highest'))
    h = h + jnp.einsum('ot,bt->bo', wt, temb, precision='highest')[:, :, None] + bias[None]
    out = jnp.tanh(h)
    return jnp.mean((out - noise_f) ** 2)


if __name__ == "__main__":
    # Small deterministic setup
    B, C, H, W = 2, 4, 16, 16        # img (mask) is (B, input_channels=4, 16, 16)
    Cc = 4                           # cond image channels
    T_EMB = 32
    TIMESTEPS = 1000

    key = jax.random.PRNGKey(0)
    k_img, k_cond, k_noise, k_t, k_wx, k_wc, k_wt = jax.random.split(key, 7)

    img = jax.random.uniform(k_img, (B, C, H, W), dtype=jnp.float32)       # in [0,1]
    cond_img = jax.random.normal(k_cond, (B, Cc, H, W), dtype=jnp.float32)
    noise = jax.random.normal(k_noise, (B, C, H, W), dtype=jnp.float32)
    times = jax.random.randint(k_t, (B,), 0, TIMESTEPS, dtype=jnp.int32)

    # diffusion buffers (cosine schedule, as in __init__)
    betas = cosine_beta_schedule(TIMESTEPS)
    alphas_cumprod = jnp.cumprod(1.0 - betas)
    sqrt_ac = jnp.sqrt(alphas_cumprod).astype(jnp.float32)
    sqrt_one_minus_ac = jnp.sqrt(1.0 - alphas_cumprod).astype(jnp.float32)

    # deterministic synthetic model weights
    wx = jax.random.normal(k_wx, (C, C), dtype=jnp.float32) * 0.2
    wc = jax.random.normal(k_wc, (C, Cc), dtype=jnp.float32) * 0.2
    wt = jax.random.normal(k_wt, (C, T_EMB), dtype=jnp.float32) * 0.05
    bias = jnp.zeros((C, 1), dtype=jnp.float32)

    loss = medsegdiff_forward(img, cond_img, noise, times,
                              sqrt_ac, sqrt_one_minus_ac,
                              wx, wc, wt, bias, t_emb_dim=T_EMB)
    loss = jax.block_until_ready(loss)

    ref = reference_forward(img, cond_img, noise, times,
                            sqrt_ac, sqrt_one_minus_ac,
                            wx, wc, wt, bias, t_emb_dim=T_EMB)
    np.testing.assert_allclose(np.asarray(loss), np.asarray(ref), rtol=1e-5, atol=1e-5)

    print("KERNEL_OK")
</pallas_src>

<mosaic_0001>
module attributes {stable_mosaic.version = 11 : i64} {
  func.func @medsegdiff_loss_kernel(%arg0: i32, %arg1: memref<3x2x4x1xf32, #tpu.memory_space<vmem>>, %arg2: memref<8x4x1xf32, #tpu.memory_space<vmem>>, %arg3: memref<2x4x128xf32, #tpu.memory_space<vmem>>, %arg4: memref<2x4x128xf32, #tpu.memory_space<vmem>>, %arg5: memref<2x4x128xf32, #tpu.memory_space<vmem>>, %arg6: memref<1x1x128xf32, #tpu.memory_space<vmem>>) attributes {dimension_semantics = [#tpu.dimension_semantics<parallel>], iteration_bounds = array<i64: 2>, scalar_prefetch = 0 : i64, scratch_operands = 0 : i64, tpu.core_type = #tpu.core_type<tc>, window_params = [{pipeline_mode = #tpu.pipeline_mode<synchronous>, transform_indices = @transform_0, window_bounds = array<i64: 3, 2, 4, 1>}, {pipeline_mode = #tpu.pipeline_mode<synchronous>, transform_indices = @transform_1, window_bounds = array<i64: 8, 4, 1>}, {transform_indices = @transform_2, window_bounds = array<i64: 2, 4, 128>}, {transform_indices = @transform_3, window_bounds = array<i64: 2, 4, 128>}, {transform_indices = @transform_4, window_bounds = array<i64: 2, 4, 128>}, {transform_indices = @transform_5, window_bounds = array<i64: 1, 1, 128>}]} {
    %c0 = arith.constant 0 : index
    %c0_0 = arith.constant 0 : index
    %c0_1 = arith.constant 0 : index
    %c0_2 = arith.constant 0 : index
    %0 = vector.load %arg1[%c0, %c0_0, %c0_1, %c0_2] : memref<3x2x4x1xf32, #tpu.memory_space<vmem>>, vector<1x2x4x1xf32>
    %1 = vector.shape_cast %0 : vector<1x2x4x1xf32> to vector<2x4x1xf32>
    %c1 = arith.constant 1 : index
    %c0_3 = arith.constant 0 : index
    %c0_4 = arith.constant 0 : index
    %c0_5 = arith.constant 0 : index
    %2 = vector.load %arg1[%c1, %c0_3, %c0_4, %c0_5] : memref<3x2x4x1xf32, #tpu.memory_space<vmem>>, vector<1x2x4x1xf32>
    %3 = vector.shape_cast %2 : vector<1x2x4x1xf32> to vector<2x4x1xf32>
    %c2 = arith.constant 2 : index
    %c0_6 = arith.constant 0 : index
    %c0_7 = arith.constant 0 : index
    %c0_8 = arith.constant 0 : index
    %4 = vector.load %arg1[%c2, %c0_6, %c0_7, %c0_8] : memref<3x2x4x1xf32, #tpu.memory_space<vmem>>, vector<1x2x4x1xf32>
    %5 = vector.shape_cast %4 : vector<1x2x4x1xf32> to vector<2x4x1xf32>
    %c0_9 = arith.constant 0 : index
    %c0_10 = arith.constant 0 : index
    %c0_11 = arith.constant 0 : index
    %6 = vector.load %arg4[%c0_9, %c0_10, %c0_11] : memref<2x4x128xf32, #tpu.memory_space<vmem>>, vector<2x4x128xf32>
    %c0_12 = arith.constant 0 : index
    %c0_13 = arith.constant 0 : index
    %c0_14 = arith.constant 0 : index
    %7 = vector.load %arg5[%c0_12, %c0_13, %c0_14] : memref<2x4x128xf32, #tpu.memory_space<vmem>>, vector<2x4x128xf32>
    %c0_15 = arith.constant 0 : index
    %c0_16 = arith.constant 0 : index
    %c0_17 = arith.constant 0 : index
    %8 = vector.load %arg3[%c0_15, %c0_16, %c0_17] : memref<2x4x128xf32, #tpu.memory_space<vmem>>, vector<2x4x128xf32>
    %9 = vector.broadcast %1 : vector<2x4x1xf32> to vector<2x4x128xf32>
    %10 = arith.mulf %9, %8 : vector<2x4x128xf32>
    %11 = vector.broadcast %3 : vector<2x4x1xf32> to vector<2x4x128xf32>
    %12 = arith.mulf %11, %6 : vector<2x4x128xf32>
    %13 = arith.addf %10, %12 : vector<2x4x128xf32>
    %c0_18 = arith.constant 0 : index
    %c0_19 = arith.constant 0 : index
    %c0_20 = arith.constant 0 : index
    %14 = vector.load %arg2[%c0_18, %c0_19, %c0_20] : memref<8x4x1xf32, #tpu.memory_space<vmem>>, vector<1x4x1xf32>
    %15 = vector.shape_cast %14 : vector<1x4x1xf32> to vector<4x1xf32>
    %16 = vector.extract_strided_slice %13 {offsets = [0, 0, 0], sizes = [2, 1, 128], strides = [1, 1, 1]} : vector<2x4x128xf32> to vector<2x1x128xf32>
    %17 = vector.shape_cast %15 : vector<4x1xf32> to vector<1x4x1xf32>
    %18 = vector.broadcast %17 : vector<1x4x1xf32> to vector<2x4x128xf32>
    %19 = vector.broadcast %16 : vector<2x1x128xf32> to vector<2x4x128xf32>
    %20 = arith.mulf %18, %19 : vector<2x4x128xf32>
    %21 = vector.broadcast %5 : vector<2x4x1xf32> to vector<2x4x128xf32>
    %22 = arith.addf %21, %20 : vector<2x4x128xf32>
    %c1_21 = arith.constant 1 : index
    %c0_22 = arith.constant 0 : index
    %c0_23 = arith.constant 0 : index
    %23 = vector.load %arg2[%c1_21, %c0_22, %c0_23] : memref<8x4x1xf32, #tpu.memory_space<vmem>>, vector<1x4x1xf32>
    %24 = vector.shape_cast %23 : vector<1x4x1xf32> to vector<4x1xf32>
    %25 = vector.extract_strided_slice %13 {offsets = [0, 1, 0], sizes = [2, 1, 128], strides = [1, 1, 1]} : vector<2x4x128xf32> to vector<2x1x128xf32>
    %26 = vector.shape_cast %24 : vector<4x1xf32> to vector<1x4x1xf32>
    %27 = vector.broadcast %26 : vector<1x4x1xf32> to vector<2x4x128xf32>
    %28 = vector.broadcast %25 : vector<2x1x128xf32> to vector<2x4x128xf32>
    %29 = arith.mulf %27, %28 : vector<2x4x128xf32>
    %30 = arith.addf %22, %29 : vector<2x4x128xf32>
    %c2_24 = arith.constant 2 : index
    %c0_25 = arith.constant 0 : index
    %c0_26 = arith.constant 0 : index
    %31 = vector.load %arg2[%c2_24, %c0_25, %c0_26] : memref<8x4x1xf32, #tpu.memory_space<vmem>>, vector<1x4x1xf32>
    %32 = vector.shape_cast %31 : vector<1x4x1xf32> to vector<4x1xf32>
    %33 = vector.extract_strided_slice %13 {offsets = [0, 2, 0], sizes = [2, 1, 128], strides = [1, 1, 1]} : vector<2x4x128xf32> to vector<2x1x128xf32>
    %34 = vector.shape_cast %32 : vector<4x1xf32> to vector<1x4x1xf32>
    %35 = vector.broadcast %34 : vector<1x4x1xf32> to vector<2x4x128xf32>
    %36 = vector.broadcast %33 : vector<2x1x128xf32> to vector<2x4x128xf32>
    %37 = arith.mulf %35, %36 : vector<2x4x128xf32>
    %38 = arith.addf %30, %37 : vector<2x4x128xf32>
    %c3 = arith.constant 3 : index
    %c0_27 = arith.constant 0 : index
    %c0_28 = arith.constant 0 : index
    %39 = vector.load %arg2[%c3, %c0_27, %c0_28] : memref<8x4x1xf32, #tpu.memory_space<vmem>>, vector<1x4x1xf32>
    %40 = vector.shape_cast %39 : vector<1x4x1xf32> to vector<4x1xf32>
    %41 = vector.extract_strided_slice %13 {offsets = [0, 3, 0], sizes = [2, 1, 128], strides = [1, 1, 1]} : vector<2x4x128xf32> to vector<2x1x128xf32>
    %42 = vector.shape_cast %40 : vector<4x1xf32> to vector<1x4x1xf32>
    %43 = vector.broadcast %42 : vector<1x4x1xf32> to vector<2x4x128xf32>
    %44 = vector.broadcast %41 : vector<2x1x128xf32> to vector<2x4x128xf32>
    %45 = arith.mulf %43, %44 : vector<2x4x128xf32>
    %46 = arith.addf %38, %45 : vector<2x4x128xf32>
    %c4 = arith.constant 4 : index
    %c0_29 = arith.constant 0 : index
    %c0_30 = arith.constant 0 : index
    %47 = vector.load %arg2[%c4, %c0_29, %c0_30] : memref<8x4x1xf32, #tpu.memory_space<vmem>>, vector<1x4x1xf32>
    %48 = vector.shape_cast %47 : vector<1x4x1xf32> to vector<4x1xf32>
    %49 = vector.extract_strided_slice %7 {offsets = [0, 0, 0], sizes = [2, 1, 128], strides = [1, 1, 1]} : vector<2x4x128xf32> to vector<2x1x128xf32>
    %50 = vector.shape_cast %48 : vector<4x1xf32> to vector<1x4x1xf32>
    %51 = vector.broadcast %50 : vector<1x4x1xf32> to vector<2x4x128xf32>
    %52 = vector.broadcast %49 : vector<2x1x128xf32> to vector<2x4x128xf32>
    %53 = arith.mulf %51, %52 : vector<2x4x128xf32>
    %54 = arith.addf %46, %53 : vector<2x4x128xf32>
    %c5 = arith.constant 5 : index
    %c0_31 = arith.constant 0 : index
    %c0_32 = arith.constant 0 : index
    %55 = vector.load %arg2[%c5, %c0_31, %c0_32] : memref<8x4x1xf32, #tpu.memory_space<vmem>>, vector<1x4x1xf32>
    %56 = vector.shape_cast %55 : vector<1x4x1xf32> to vector<4x1xf32>
    %57 = vector.extract_strided_slice %7 {offsets = [0, 1, 0], sizes = [2, 1, 128], strides = [1, 1, 1]} : vector<2x4x128xf32> to vector<2x1x128xf32>
    %58 = vector.shape_cast %56 : vector<4x1xf32> to vector<1x4x1xf32>
    %59 = vector.broadcast %58 : vector<1x4x1xf32> to vector<2x4x128xf32>
    %60 = vector.broadcast %57 : vector<2x1x128xf32> to vector<2x4x128xf32>
    %61 = arith.mulf %59, %60 : vector<2x4x128xf32>
    %62 = arith.addf %54, %61 : vector<2x4x128xf32>
    %c6 = arith.constant 6 : index
    %c0_33 = arith.constant 0 : index
    %c0_34 = arith.constant 0 : index
    %63 = vector.load %arg2[%c6, %c0_33, %c0_34] : memref<8x4x1xf32, #tpu.memory_space<vmem>>, vector<1x4x1xf32>
    %64 = vector.shape_cast %63 : vector<1x4x1xf32> to vector<4x1xf32>
    %65 = vector.extract_strided_slice %7 {offsets = [0, 2, 0], sizes = [2, 1, 128], strides = [1, 1, 1]} : vector<2x4x128xf32> to vector<2x1x128xf32>
    %66 = vector.shape_cast %64 : vector<4x1xf32> to vector<1x4x1xf32>
    %67 = vector.broadcast %66 : vector<1x4x1xf32> to vector<2x4x128xf32>
    %68 = vector.broadcast %65 : vector<2x1x128xf32> to vector<2x4x128xf32>
    %69 = arith.mulf %67, %68 : vector<2x4x128xf32>
    %70 = arith.addf %62, %69 : vector<2x4x128xf32>
    %c7 = arith.constant 7 : index
    %c0_35 = arith.constant 0 : index
    %c0_36 = arith.constant 0 : index
    %71 = vector.load %arg2[%c7, %c0_35, %c0_36] : memref<8x4x1xf32, #tpu.memory_space<vmem>>, vector<1x4x1xf32>
    %72 = vector.shape_cast %71 : vector<1x4x1xf32> to vector<4x1xf32>
    %73 = vector.extract_strided_slice %7 {offsets = [0, 3, 0], sizes = [2, 1, 128], strides = [1, 1, 1]} : vector<2x4x128xf32> to vector<2x1x128xf32>
    %74 = vector.shape_cast %72 : vector<4x1xf32> to vector<1x4x1xf32>
    %75 = vector.broadcast %74 : vector<1x4x1xf32> to vector<2x4x128xf32>
    %76 = vector.broadcast %73 : vector<2x1x128xf32> to vector<2x4x128xf32>
    %77 = arith.mulf %75, %76 : vector<2x4x128xf32>
    %78 = arith.addf %70, %77 : vector<2x4x128xf32>
    %79 = math.tanh %78 : vector<2x4x128xf32>
    %80 = arith.subf %79, %6 : vector<2x4x128xf32>
    %81 = arith.mulf %80, %80 : vector<2x4x128xf32>
    %cst = arith.constant dense<0.000000e+00> : vector<2x128xf32>
    %82 = vector.multi_reduction <add>, %81, %cst [1] : vector<2x4x128xf32> to vector<2x128xf32>
    %83 = vector.shape_cast %82 : vector<2x128xf32> to vector<2x1x128xf32>
    %cst_37 = arith.constant dense<0.000000e+00> : vector<1x128xf32>
    %84 = vector.multi_reduction <add>, %83, %cst_37 [0] : vector<2x1x128xf32> to vector<1x128xf32>
    %85 = vector.shape_cast %84 : vector<1x128xf32> to vector<1x1x128xf32>
    %c0_38 = arith.constant 0 : index
    %c0_39 = arith.constant 0 : index
    %c0_40 = arith.constant 0 : index
    %86 = vector.load %arg6[%c0_38, %c0_39, %c0_40] : memref<1x1x128xf32, #tpu.memory_space<vmem>>, vector<1x1x128xf32>
    tpu.vector_store %arg6[%c0_38, %c0_39, %c0_40], %85 {strides = array<i32>} : memref<1x1x128xf32, #tpu.memory_space<vmem>>, vector<1x1x128xf32>,
    return
  }
  func.func @transform_0(%arg0: i32) -> (i32, i32, i32, i32) {
    %c0_i32 = arith.constant 0 : i32
    %c0_i32_0 = arith.constant 0 : i32
    %c0_i32_1 = arith.constant 0 : i32
    %c0_i32_2 = arith.constant 0 : i32
    %c0_i32_3 = arith.constant 0 : i32
    return %c0_i32, %c0_i32_0, %c0_i32_1, %c0_i32_2 : i32, i32, i32, i32
  }
  func.func @transform_1(%arg0: i32) -> (i32, i32, i32) {
    %c0_i32 = arith.constant 0 : i32
    %c0_i32_0 = arith.constant 0 : i32
    %c0_i32_1 = arith.constant 0 : i32
    %c0_i32_2 = arith.constant 0 : i32
    return %c0_i32, %c0_i32_0, %c0_i32_1 : i32, i32, i32
  }
  func.func @transform_2(%arg0: i32) -> (i32, i32, i32) {
    %c0_i32 = arith.constant 0 : i32
    %c0_i32_0 = arith.constant 0 : i32
    %c0_i32_1 = arith.constant 0 : i32
    return %c0_i32, %c0_i32_0, %arg0 : i32, i32, i32
  }
  func.func @transform_3(%arg0: i32) -> (i32, i32, i32) {
    %c0_i32 = arith.constant 0 : i32
    %c0_i32_0 = arith.constant 0 : i32
    %c0_i32_1 = arith.constant 0 : i32
    return %c0_i32, %c0_i32_0, %arg0 : i32, i32, i32
  }
  func.func @transform_4(%arg0: i32) -> (i32, i32, i32) {
    %c0_i32 = arith.constant 0 : i32
    %c0_i32_0 = arith.constant 0 : i32
    %c0_i32_1 = arith.constant 0 : i32
    return %c0_i32, %c0_i32_0, %arg0 : i32, i32, i32
  }
  func.func @transform_5(%arg0: i32) -> (i32, i32, i32) {
    %c0_i32 = arith.constant 0 : i32
    %c0_i32_0 = arith.constant 0 : i32
    %c0_i32_1 = arith.constant 0 : i32
    return %arg0, %c0_i32, %c0_i32_0 : i32, i32, i32
  }
}

</mosaic_0001>

<bundles_post_ra>
// kernel: tpu_custom_call.1
= control target key start
LH: loop header
LB: loop body
LE: loop exit
PB: predicated region body
PF: predicated region fallthrough
CT: control target
= control target key end

     0   :  { %10 = vsyncpa [#allocation6], 0  ;;  %s1027_s0 = inlined_call_operand.vmem [shape: f32[3,2,4,1], index: 0, kind: input, shape index: {}]   ;;  %s1028_s1 = inlined_call_operand.vmem [shape: f32[8,4,1], index: 1, kind: input, shape index: {}]   ;;  %s1029_s2 = inlined_call_operand.vmem [shape: f32[2,4,256], index: 2, kind: input, shape index: {}]   ;;  %s1030_s3 = inlined_call_operand.vmem [shape: f32[2,4,256], index: 3, kind: input, shape index: {}]   ;;  %s1031_s4 = inlined_call_operand.vmem [shape: f32[2,4,256], index: 4, kind: input, shape index: {}]   ;;  %s1032_s5 = inlined_call_operand.hbm [shape: f32[2,1,128], index: 5, kind: output, shape index: {}]  }
   0x1   :  { %12 = vsyncpa [#allocation6 + $0x1], 0  ;;  %s857_s18 = smov 0   ;;  %s859_s19 = smov 0  }
   0x2   :  { %s861_s20 = smov 0   ;;  %s863_s21 = smov 0  }
   0x3 LB: > { %s688_s22 = sadd.s32 4294967295, %s824_s21   ;;  %s689_s23 = sadd.s32 4294967294, %s824_s21   ;;  %s824_s21 = sphi %s863_s21, %s1039_s21   ;;  %s820_s20 = sphi %s861_s20, %s1038_s20   ;;  %s816_s19 = sphi %s859_s19, %s1037_s19   ;;  %s812_s18 = sphi %s857_s18, %s1036_s18  }
   0x4   : > { %s880_s24 = sadd.s32 1, %s824_s21   ;;  %s67_s25 = sadd.s32 1, %s820_s20 }
   0x5   : > { %s64_s26 = ssub.s32 %s824_s21, %s880_s24  ;;  %p74_p0 = scmp.ne.s32.totalorder %s820_s20, %s816_s19 }
   0x6   : > { %p65_p1 = scmp.eq.s32.totalorder %s64_s26, 0  ;;  %p75_p2 = scmp.eq.s32.totalorder %s824_s21, 0 }
   0x7   : > { %p156_p3 = scmp.eq.s32.totalorder %s688_s22, 1  ;;  %p161_p4 = scmp.ne.s32.totalorder %s816_s19, %s812_s18 }
   0x8   : > { %s893_s27 = scalar_select %p65_p1, %s820_s20, %s67_s25  }
   0x9   : > { %p895_p5 = por %p75_p2, %p74_p0  ;;  %p899_p6 = por %p156_p3, %p74_p0 }
   0xa   : > { %p162_p7 = scmp.eq.s32.totalorder %s689_s23, 1  ;;  %p691_p9 = scmp.ge.s32.totalorder %s824_s21, 2 }
   0xc   : > { %p903_p8 = por %p162_p7, %p161_p4  ;;  %184 = sbr.rel (%p691_p9) target bundleno = 35 (0x23), region = 24 }
  0x11   : > { %187 = sbr.rel (!%p895_p5) target bundleno = 23 (0x17), region = 28  ;;  %s189_s6 = sand.u32 (%p895_p5), 1, %s820_s20  }
  0x12   : > { %s693_s7 = sshll.u32 (%p895_p5), %s824_s21, 2  ;;  %s692_s8 = sshll.u32 (%p895_p5), %s189_s6, 3 }
  0x13   : > { %s193_s11 = scalar_lea.vmem (%p895_p5), %s1029_s2, %s693_s7  ;;  %s191_s12 = scalar_lea.vmem (%p895_p5), [#allocation2], %s692_s8 }
  0x14   : > { %v210_v0 = vld [vmem:[%s193_s11] sm:$0xf] (%p895_p5)  ;;  %v212_v1 = vld [vmem:[%s193_s11 + $0x8] sm:$0xf] (%p895_p5) }
  0x15   : > { %211 = vst [vmem:[%s191_s12] sm:$0xf] (%p895_p5), %v210_v0 }
  0x16   : > { %213 = vst [vmem:[%s191_s12 + $0x4] sm:$0xf] %v212_v1 }
  0x17 PF: > { %241 = sbr.rel (!%p895_p5) target bundleno = 29 (0x1d), region = 69  ;;  %s243_s13 = sand.u32 (%p895_p5), 1, %s820_s20  }
  0x18   : > { %s695_s14 = sshll.u32 (%p895_p5), %s824_s21, 2  ;;  %s694_s15 = sshll.u32 (%p895_p5), %s243_s13, 3 }
  0x19   : > { %s247_s23 = scalar_lea.vmem (%p895_p5), %s1030_s3, %s695_s14  ;;  %s245_s25 = scalar_lea.vmem (%p895_p5), [#allocation3], %s694_s15 }
  0x1a   : > { %v264_v2 = vld [vmem:[%s247_s23] sm:$0xf] (%p895_p5)  ;;  %v266_v3 = vld [vmem:[%s247_s23 + $0x8] sm:$0xf] (%p895_p5) }
  0x1b   : > { %265 = vst [vmem:[%s245_s25] sm:$0xf] (%p895_p5), %v264_v2 }
  0x1c   : > { %267 = vst [vmem:[%s245_s25 + $0x4] sm:$0xf] %v266_v3 }
  0x1d PF: > { %295 = sbr.rel (!%p895_p5) target bundleno = 35 (0x23), region = 110  ;;  %s297_s26 = sand.u32 (%p895_p5), 1, %s820_s20  }
  0x1e   : > { %s697_s6 = sshll.u32 (%p895_p5), %s824_s21, 2  ;;  %s696_s7 = sshll.u32 (%p895_p5), %s297_s26, 3 }
  0x1f   : > { %s301_s10 = scalar_lea.vmem (%p895_p5), %s1031_s4, %s697_s6  ;;  %s299_s11 = scalar_lea.vmem (%p895_p5), [#allocation4], %s696_s7 }
  0x20   : > { %v318_v4 = vld [vmem:[%s301_s10] sm:$0xf] (%p895_p5)  ;;  %v320_v5 = vld [vmem:[%s301_s10 + $0x8] sm:$0xf] (%p895_p5) }
  0x21   : > { %319 = vst [vmem:[%s299_s11] sm:$0xf] (%p895_p5), %v318_v4 }
  0x22   : > { %321 = vst [vmem:[%s299_s11 + $0x4] sm:$0xf] %v320_v5 }
  0x23 PF: > { %p698_p10 = scmp.ge.s32.totalorder %s824_s21, 1  ;;  %p348_p11 = scmp.lt.s32.totalorder %s824_s21, 3 }
  0x25   : > { %p349_p12 = pnand %p698_p10, %p348_p11 }
  0x26   : > { %s976_s8 = sand.u32 (!%p349_p12), 1, %s816_s19   ;;  %s588_s14 = scalar_lea.hbm (!%p349_p12), %s1032_s5, %s688_s22 }
  0x27   : > { %352 = sbr.rel (%p349_p12) target bundleno = 229 (0xe5), region = 151  ;;  %s979_s9 = sshll.u32 (!%p349_p12), %s976_s8, 3 }
  0x28   : > { %s364_s10 = scalar_lea.vmem (!%p349_p12), [#allocation3], %s979_s9  ;;  %s357_s11 = scalar_lea.vmem (!%p349_p12), [#allocation2], %s979_s9 }
  0x29   : > { %s371_s28 = scalar_lea.vmem (!%p349_p12), [#allocation4], %s979_s9  ;;  %s402_s15 = scalar_lea.vmem (!%p349_p12), [#allocation5], %s976_s8 }
  0x2a   : > { %s590_s16 = sshll.u32 (!%p349_p12), %s402_s15, 4  ;;  %s592_s17 = sshll.u32 (!%p349_p12), %s588_s14, 4  ;;  %s591_s16 = int_to_ptr.vmem [resolvable:$true] %s590_s16  ;;  %s593_s17 = int_to_ptr.hbm [resolvable:$true] %s592_s17 }
  0x2b   : > { %s580_s23 = scalar_lea.sflag (!%p349_p12), [#allocation6], %s976_s8  ;;  %s776_s25 = sshra.s32 (!%p349_p12), %s593_s17, 4  ;;  %s777_s25 = int_to_ptr.hbm [resolvable:$true] %s776_s25 }
  0x2c   : > { %v702_v6 = vld [vmem:[%s1027_s0 + $0x8] sm:$0xf]  ;;  %v403_v7 = vld [vmem:[%s1027_s0] sm:$0xf]  ;;  %v826_v8 = vmov 0   ;;  %vm562_vm0 = vcmask 1043456   ;;  %p783_p2 = scmp.lt.s32.totalorder %s777_s25, %s1032_s5 }
  0x2d   : > { %756 = vset.pattern.permute.xlu1 %v826_v8  ;;  %755 = vset.pattern.permute.xlu0 %v826_v8  ;;  %v443_v9 = vld [vmem:[%s1028_s1] sm:$0xf]  ;;  %v703_v10 = vld [vmem:[%s1027_s0 + $0xc] sm:$0xf]  ;;  %v404_v11 = vld [vmem:[%s1027_s0 + $0x4] sm:$0xf] }
  0x2e   : > { %431 = vperm.xlu1 %756, %v702_v6   ;;  %419 = vperm.xlu0 %755, %v403_v7   ;;  %v704_v12 = vld [vmem:[%s1027_s0 + $0x10] sm:$0xf]  ;;  %v706_v13 = vld [vmem:[%s1028_s1 + $0x4] sm:$0xf]  ;;  %v705_v14 = vld [vmem:[%s1027_s0 + $0x14] sm:$0xf] }
  0x2f   : > { %757 = vset.pattern.permute.xlu2 %v826_v8  ;;  %v707_v15 = vld [vmem:[%s1028_s1 + $0x8] sm:$0xf]  ;;  %v709_v16 = vld [vmem:[%s1028_s1 + $0x10] sm:$0xf]  ;;  %v708_v17 = vld [vmem:[%s1028_s1 + $0xc] sm:$0xf] }
  0x30   : > { %446 = vperm.xlu2 %757, %v443_v9   ;;  %v710_v18 = vld [vmem:[%s1028_s1 + $0x14] sm:$0xf]  ;;  %v712_v19 = vld [vmem:[%s1028_s1 + $0x1c] sm:$0xf]  ;;  %v711_v20 = vld [vmem:[%s1028_s1 + $0x18] sm:$0xf] }
  0x31   : > { %v982_v23 = vld [vmem:[%s364_s10] sm:$0xf]  ;;  %v415_v25 = vld [vmem:[%s357_s11] sm:$0xf]  ;;  %v986_v28 = vld [vmem:[%s364_s10 + $0x4] sm:$0xf] }
  0x32   : > { %v416_v29 = vld [vmem:[%s357_s11 + $0x4] sm:$0xf]  ;;  %v413_v52 = vld [vmem:[%s371_s28] sm:$0xf]  ;;  %s778_s26 = scalar_lea.hbm %s777_s25, 1  ;;  %s782_s7 = scalar_lea.hbm %s1032_s5, 2 }
  0x33   : > { %v414_v53 = vld [vmem:[%s371_s28 + $0x4] sm:$0xf]  ;;  %v511_v56 = vperm.slane %v413_v52, 0  ;;  %v524_v4 = vperm.slane %v413_v52, 1  ;;  %p779_p13 = scmp.ne.s32.totalorder %s777_s25, %s778_s26  ;;  %p784_p3 = scmp.lt.s32.totalorder %s782_s7, %s778_s26 }
  0x34   : > { %v512_v57 = vperm.slane %v414_v53, 0  ;;  %v525_v5 = vperm.slane %v414_v53, 1 }
  0x35   : > { %p780_p0 = pnand %p779_p13, %p899_p6  ;;  %p785_p4 = por %p784_p3, %p783_p2 }
  0x36   : > { %436 = vperm.xlu1 %756, %v703_v10   ;;  %424 = vperm.xlu0 %755, %v404_v11  }
  0x37   : > { %p781_p1 = pneg %p780_p0 }
  0x38   : > { %455 = vperm.xlu2 %757, %v704_v12  }
  0x39   : > { %p786_p5 = pnand %p785_p4, %p781_p1 }
  0x3e   : > { %469 = vperm.xlu1 %756, %v706_v13   ;;  %460 = vperm.xlu0 %755, %v705_v14   ;;  %v537_v13 = vperm.slane %v413_v52, 2  ;;  %v538_v14 = vperm.slane %v414_v53, 2 }
  0x40   : > { %482 = vperm.xlu2 %757, %v707_v15  }
  0x46   : > { %508 = vperm.xlu1 %756, %v709_v16   ;;  %495 = vperm.xlu0 %755, %v708_v17   ;;  %v550_v17 = vperm.slane %v413_v52, 3 }
  0x48   : > { %521 = vperm.xlu2 %757, %v710_v18   ;;  %v551_v18 = vperm.slane %v414_v53, 3 }
  0x4e   : > { %547 = vperm.xlu1 %756, %v712_v19   ;;  %534 = vperm.xlu0 %755, %v711_v20  }
  0x8a   : > { %v447_v21 = vpop.permute.xlu2 %446 }
  0x92   : > { %v456_v30 = vpop.permute.xlu2 %455 }
  0x9a   : > { %v483_v48 = vpop.permute.xlu2 %482 }
  0xa0   : > { %v432_v22 = vpop.permute.xlu1 %431  ;;  %v420_v24 = vpop.permute.xlu0 %419 }
  0xa1   : > { %v439_v26 = vmul.f32 %v432_v22, %v982_v23  ;;  %v427_v27 = vmul.f32 %v420_v24, %v415_v25 }
  0xa2   : > { %v522_v10 = vpop.permute.xlu2 %521 }
  0xa3   : > { %v441_v31 = vadd.f32 %v439_v26, %v427_v27  ;;  %v526_v15 = vmul.f32 %v524_v4, %v522_v10  ;;  %v527_v16 = vmul.f32 %v525_v5, %v522_v10 }
  0xa5   : > { %v449_v37 = vperm.slane %v441_v31, 0  ;;  %v472_v40 = vperm.slane %v441_v31, 1  ;;  %v485_v51 = vperm.slane %v441_v31, 2  ;;  %v498_v60 = vperm.slane %v441_v31, 3 }
  0xa7   : > { %v451_v39 = vmul.f32 %v449_v37, %v447_v21  ;;  %v487_v59 = vmul.f32 %v485_v51, %v483_v48 }
  0xa8   : > { %v437_v32 = vpop.permute.xlu1 %436  ;;  %v425_v33 = vpop.permute.xlu0 %424 }
  0xa9   : > { %v440_v34 = vmul.f32 %v437_v32, %v986_v28  ;;  %v428_v35 = vmul.f32 %v425_v33, %v416_v29  ;;  %v463_v49 = vadd.f32 %v456_v30, %v451_v39 }
  0xab   : > { %v442_v36 = vadd.f32 %v440_v34, %v428_v35 }
  0xad   : > { %v450_v38 = vperm.slane %v442_v36, 0  ;;  %v473_v41 = vperm.slane %v442_v36, 1  ;;  %v486_v50 = vperm.slane %v442_v36, 2  ;;  %v499_v61 = vperm.slane %v442_v36, 3 }
  0xaf   : > { %v452_v42 = vmul.f32 %v450_v38, %v447_v21  ;;  %v488_v58 = vmul.f32 %v486_v50, %v483_v48 }
  0xb0   : > { %v470_v43 = vpop.permute.xlu1 %469  ;;  %v461_v44 = vpop.permute.xlu0 %460 }
  0xb1   : > { %v474_v45 = vmul.f32 %v472_v40, %v470_v43  ;;  %v475_v46 = vmul.f32 %v473_v41, %v470_v43  ;;  %v464_v47 = vadd.f32 %v461_v44, %v452_v42 }
  0xb3   : > { %v476_v54 = vadd.f32 %v474_v45, %v463_v49  ;;  %v477_v55 = vadd.f32 %v475_v46, %v464_v47 }
  0xb5   : > { %v490_v0 = vadd.f32 %v488_v58, %v477_v55  ;;  %v489_v1 = vadd.f32 %v487_v59, %v476_v54 }
  0xb8   : > { %v509_v62 = vpop.permute.xlu1 %508  ;;  %v496_v63 = vpop.permute.xlu0 %495 }
  0xb9   : > { %v500_v2 = vmul.f32 %v498_v60, %v496_v63  ;;  %v501_v3 = vmul.f32 %v499_v61, %v496_v63  ;;  %v513_v6 = vmul.f32 %v511_v56, %v509_v62  ;;  %v514_v7 = vmul.f32 %v512_v57, %v509_v62 }
  0xbb   : > { %v502_v8 = vadd.f32 %v500_v2, %v489_v1  ;;  %v503_v9 = vadd.f32 %v501_v3, %v490_v0 }
  0xbd   : > { %v515_v11 = vadd.f32 %v513_v6, %v502_v8  ;;  %v516_v12 = vadd.f32 %v514_v7, %v503_v9 }
  0xbf   : > { %v528_v21 = vadd.f32 %v526_v15, %v515_v11  ;;  %v529_v22 = vadd.f32 %v527_v16, %v516_v12 }
  0xc0   : > { %v548_v19 = vpop.permute.xlu1 %547  ;;  %v535_v20 = vpop.permute.xlu0 %534 }
  0xc1   : > { %v539_v24 = vmul.f32 %v537_v13, %v535_v20  ;;  %v540_v25 = vmul.f32 %v538_v14, %v535_v20  ;;  %v552_v26 = vmul.f32 %v550_v17, %v548_v19  ;;  %v553_v27 = vmul.f32 %v551_v18, %v548_v19 }
  0xc3   : > { %v541_v29 = vadd.f32 %v539_v24, %v528_v21  ;;  %v542_v30 = vadd.f32 %v540_v25, %v529_v22 }
  0xc5   : > { %v554_v31 = vadd.f32 %v552_v26, %v541_v29  ;;  %v555_v32 = vadd.f32 %v553_v27, %v542_v30 }
  0xc7   : > { %758 = vtanh.f32 %v554_v31 }
  0xc8   : > { %760 = vtanh.f32 %v555_v32 }
  0xcd   : > { %v759_v33 = vpop.eup %758 }
  0xce   : > { %v761_v34 = vpop.eup %760  ;;  %v558_v35 = vsub.f32 %v759_v33, %v982_v23 }
  0xcf   : > { %v559_v36 = vsub.f32 %v761_v34, %v986_v28 }
  0xd0   : > { %v560_v37 = vmul.f32 %v558_v35, %v558_v35 }
  0xd1   : > { %v561_v38 = vmul.f32 %v559_v36, %v559_v36 }
  0xd2   : > { %v563_v39 = vsel %vm562_vm0, %v560_v37, 0.0 }
  0xd3   : > { %v564_v40 = vrot.slane %v563_v39, 4  ;;  %v570_v41 = vsel %vm562_vm0, %v561_v38, 0.0 }
  0xd4   : > { %v571_v42 = vrot.slane %v570_v41, 4 }
  0xd5   : > { %v565_v43 = vadd.f32 %v564_v40, %v563_v39 }
  0xd6   : > { %v572_v44 = vadd.f32 %v571_v42, %v570_v41 }
  0xd7   : > { %v566_v45 = vrot.slane %v565_v43, 2 }
  0xd8   : > { %v573_v46 = vrot.slane %v572_v44, 2 }
  0xd9   : > { %v567_v47 = vadd.f32 %v566_v45, %v565_v43 }
  0xda   : > { %v574_v48 = vadd.f32 %v573_v46, %v572_v44 }
  0xdb   : > { %v568_v23 = vrot.slane %v567_v47, 1 }
  0xdc   : > { %v575_v28 = vrot.slane %v574_v48, 1 }
  0xdd   : > { %v569_v49 = vadd.f32 %v568_v23, %v567_v47 }
  0xde   : > { %v576_v50 = vadd.f32 %v575_v28, %v574_v48 }
  0xe0   : > { %v577_v51 = vadd.f32 %v576_v50, %v569_v49 }
  0xe2   : > { %578 = vst [vmem:[%s402_s15] sm:$0x1] %v577_v51 }
  0xe3   : > { %789 = shalt.err (!%p786_p5)
}
  0xe4   : > { %715 = dma.vmem_to_hbm [thread:$0]  (%p899_p6), %s591_s16, 16, %s593_s17, %s580_s23  }
  0xe5 PF: > { %s604_s8 = sand.u32 1, %s812_s18   ;;  %p718_p7 = pnand %p691_p9, %p903_p8 }
  0xe6   : > { %s605_s11 = scalar_lea.sflag [#allocation6], %s604_s8 }
  0xe7   : > { %p719_p10 = pneg %p718_p7 }
  0xe9   : > { %807 = dma.done.wait (%p719_p10), %s605_s11, 16  }
  0xea   : > { %809 = vsyncadd (%p719_p10), %s605_s11, 4294967280  ;;  %p15_p11 = scmp.ge.s32.totalorder %s880_s24, 4   ;;  %s1036_s18 = smov %s816_s19 }
  0xeb   : > { %s1037_s19 = smov %s820_s20  ;;  %s1038_s20 = smov %s893_s27 }
  0xec   : > { %s1039_s21 = smov %s880_s24  ;;  %17 = sbr.rel (!%p15_p11) target bundleno = 3 (0x3), region = 228 }
  0xf1   :  { %610 = vsyncpa [#allocation6], 1 }
  0xf2   :  { %612 = vsyncpa [#allocation6 + $0x1], 1 }

</bundles_post_ra>
